<compile_context>
chip_gen: v5e
topology: v5e:2x2
jax: 0.10.0
libtpu: 0.0.40
codegen_flags: <defaults>
</compile_context>

<pallas_src>
import functools

import jax
import jax.numpy as jnp
from jax.experimental import pallas as pl
from jax.experimental.pallas import tpu as pltpu


def _relu_kernel(x_ref, o_ref):
    # Elementwise max with zero on the VPU.
    o_ref[...] = jnp.maximum(x_ref[...], jnp.zeros((), dtype=x_ref.dtype))


# Lane-width candidates (multiples of 128), widest first: wide, unmasked
# full-width stores and fewer grid steps.
_COL_CANDIDATES = (8192, 4096, 2048, 1024, 512, 384, 256, 128)
_SMALL_BYTES = 512 * 1024               # below this: single whole-array block


@functools.lru_cache(maxsize=1)
def _tpu_config():
    """(target_block_bytes, vmem_limit_bytes, num_tensorcores) for this chip."""
    kind = ""
    try:
        kind = (jax.devices()[0].device_kind or "").lower()
    except Exception:
        pass
    if "v7" in kind:
        # 3.2 TB/s HBM + 64 MiB VMEM + 2 TensorCores: 8 MiB blocks keep the
        # fixed per-step overhead <10%; 4 buffers x 8 MiB = 32 MiB scoped.
        return 8 * 1024 * 1024, 40 * 1024 * 1024, 2
    # v5e / v6e (single TensorCore): 4 MiB blocks. in+out double-buffered is
    # 16 MiB, which exceeds v5e's 16 MiB scoped-VMEM default -> raise it.
    return 4 * 1024 * 1024, 32 * 1024 * 1024, 1


def _cost(n_elems, itemsize):
    return pl.CostEstimate(
        flops=n_elems, transcendentals=0, bytes_accessed=2 * n_elems * itemsize
    )


def _relu_single_block(x):
    # Whole array as one block: block dims == full dims, so the (8, 128)
    # tiling constraint does not apply and no reshape/pad is needed.
    return pl.pallas_call(
        _relu_kernel,
        out_shape=jax.ShapeDtypeStruct(x.shape, x.dtype),
        cost_estimate=_cost(x.size, x.dtype.itemsize),
    )(x)


def _relu_tiled_2d(x2d, block_rows, vmem_limit_bytes):
    rows, cols = x2d.shape
    grid_rows = pl.cdiv(rows, block_rows)  # partial edge block is masked
    return pl.pallas_call(
        _relu_kernel,
        out_shape=jax.ShapeDtypeStruct((rows, cols), x2d.dtype),
        grid=(grid_rows,),
        in_specs=[pl.BlockSpec((block_rows, cols), lambda i: (i, 0))],
        out_specs=pl.BlockSpec((block_rows, cols), lambda i: (i, 0)),
        compiler_params=pltpu.CompilerParams(
            dimension_semantics=("parallel",),
            vmem_limit_bytes=vmem_limit_bytes,
        ),
        cost_estimate=_cost(rows * cols, x2d.dtype.itemsize),
    )(x2d)


def _pick_block_rows(rows, row_bytes, pack, target_bytes, num_tc):
    # ~target_bytes per pipeline buffer, rows a multiple of the dtype's
    # sublane packing so blocks stay vreg-aligned.
    block_rows = max(pack, (target_bytes // max(row_bytes, 1)) // pack * pack)
    # Never taller than the largest whole multiple of `pack` that fits in the
    # array (avoids a single oversized, mostly-masked block).
    whole = (rows // pack) * pack
    if whole >= pack:
        block_rows = min(block_rows, whole)
    if num_tc > 1:
        # >= 2 blocks per TensorCore so each core can still double-buffer its
        # input DMA / compute / output DMA.
        cap = (rows // (2 * num_tc)) // pack * pack
        if cap >= pack:
            block_rows = min(block_rows, cap)
    return block_rows


def relu(x: jax.Array) -> jax.Array:
    """torch.ops.aten.relu.default(x) for any shape/dtype via a Pallas TPU kernel."""
    if x.size == 0:
        return x

    orig_shape = x.shape
    itemsize = x.dtype.itemsize
    total = x.size
    nbytes = total * itemsize

    # Fast path: tiny tensors are overhead-dominated; one whole-array block.
    if nbytes <= _SMALL_BYTES:
        return _relu_single_block(x)

    target_bytes, vmem_limit, num_tc = _tpu_config()
    pack = max(8, 32 // itemsize)  # sublane packing: 8 f32, 16 bf16, 32 int8

    # Preferred path: widest lane count (multiple of 128) that divides the
    # element count -> zero-copy reshape to a lane-dense slab, no padding.
    cols = 0
    for c in _COL_CANDIDATES:
        if total % c == 0:
            cols = c
            break

    if cols:
        rows = total // cols
    else:
        # Ragged total (rare for NN shapes): zero-copy 2D view whose trailing
        # extent is the block's full last dim (so the 128-lane divisibility
        # requirement does not apply); tile the leading axis and let Pallas
        # mask the partial edge block. No pad before / slice after.
        cols = orig_shape[-1]
        for k in range(len(orig_shape) - 2, -1, -1):
            nt = cols * orig_shape[k]
            if nt * itemsize > target_bytes:
                break
            cols = nt
        rows = total // cols

    x2d = x.reshape(rows, cols)

    if rows < pack:
        # Only reachable on the ragged path (a whole row already nearly fills
        # the block budget): a single whole-array block is the cheapest option.
        return _relu_single_block(x2d).reshape(orig_shape)

    block_rows = _pick_block_rows(rows, cols * itemsize, pack, target_bytes, num_tc)
    out2d = _relu_tiled_2d(x2d, block_rows, vmem_limit)
    return out2d.reshape(orig_shape)


if __name__ == "__main__":
    key = jax.random.PRNGKey(0)

    # Small NCHW input consistent with a densenet feature map (small-input path).
    x = jax.random.normal(key, (2, 4, 16, 16), dtype=jnp.float32)
    y = jax.block_until_ready(relu(x))
    y_ref = jnp.maximum(x, 0.0)
    assert y.shape == x.shape and y.dtype == x.dtype
    assert bool(jnp.all(y == y_ref))

    # Larger densenet161-like activation to exercise the tiled, lane-dense path
    # (including a masked partial edge block).
    x_big = jax.random.normal(jax.random.PRNGKey(1), (8, 96, 56, 56), dtype=jnp.float32)
    y_big = jax.block_until_ready(relu(x_big))
    assert y_big.shape == x_big.shape and y_big.dtype == x_big.dtype
    assert bool(jnp.all(y_big == jnp.maximum(x_big, 0.0)))

    # Ragged element count (not a multiple of 128) to exercise the masked-tail
    # fallback (no pad / slice passes).
    x_rag = jax.random.normal(jax.random.PRNGKey(2), (3, 7, 251, 129), dtype=jnp.float32)
    y_rag = jax.block_until_ready(relu(x_rag))
    assert y_rag.shape == x_rag.shape and y_rag.dtype == x_rag.dtype
    assert bool(jnp.all(y_rag == jnp.maximum(x_rag, 0.0)))

    print("KERNEL_OK")
</pallas_src>

<mosaic_0001>
module attributes {stable_mosaic.version = 11 : i64} {
  func.func @_relu_kernel(%arg0: memref<2x4x16x16xf32, #tpu.memory_space<vmem>>, %arg1: memref<2x4x16x16xf32, #tpu.memory_space<vmem>>) attributes {dimension_semantics = [], scalar_prefetch = 0 : i64, scratch_operands = 0 : i64, tpu.core_type = #tpu.core_type<tc>} {
    %c0 = arith.constant 0 : index
    %c0_0 = arith.constant 0 : index
    %c0_1 = arith.constant 0 : index
    %c0_2 = arith.constant 0 : index
    %0 = vector.load %arg0[%c0, %c0_0, %c0_1, %c0_2] : memref<2x4x16x16xf32, #tpu.memory_space<vmem>>, vector<2x4x16x16xf32>
    %cst = arith.constant 0.000000e+00 : f32
    %1 = vector.broadcast %cst : f32 to vector<2x4x16x16xf32>
    %2 = arith.maximumf %0, %1 : vector<2x4x16x16xf32>
    %c0_3 = arith.constant 0 : index
    %c0_4 = arith.constant 0 : index
    %c0_5 = arith.constant 0 : index
    %c0_6 = arith.constant 0 : index
    %3 = vector.load %arg1[%c0_3, %c0_4, %c0_5, %c0_6] : memref<2x4x16x16xf32, #tpu.memory_space<vmem>>, vector<2x4x16x16xf32>
    tpu.vector_store %arg1[%c0_3, %c0_4, %c0_5, %c0_6], %2 {strides = array<i32>} : memref<2x4x16x16xf32, #tpu.memory_space<vmem>>, vector<2x4x16x16xf32>,
    return
  }
}

</mosaic_0001>

<bundles_post_ra>
// kernel: tpu_custom_call.1
= control target key start
LH: loop header
LB: loop body
LE: loop exit
PB: predicated region body
PF: predicated region fallthrough
CT: control target
= control target key end

     0   :  { %6 = vsyncpa [#allocation3], 0  ;;  %s191_s0 = inlined_call_operand.hbm [shape: f32[2,4,16,16], index: 0, kind: input, shape index: {}]   ;;  %s192_s1 = inlined_call_operand.hbm [shape: f32[2,4,16,16], index: 1, kind: output, shape index: {}]  }
   0x1   :  { %7 = vsyncpa [#allocation4], 0  ;;  %s12_s8 = sshll.u32 %s191_s0, 4  ;;  %s149_s9 = smov [#allocation2]   ;;  %s13_s8 = int_to_ptr.hbm [resolvable:$true] %s12_s8 }
   0x2   :  { %s14_s10 = sshll.u32 %s149_s9, 4  ;;  %s150_s11 = smov 128   ;;  %s15_s10 = int_to_ptr.vmem [resolvable:$true] %s14_s10 }
   0x3   :  { %s151_s12 = smov 8  }
   0x4   :  { %20 = dma.hbm_to_vmem [thread:$0]  %s13_s8, 2048, %s15_s10, [#allocation3], %s150_s11, %s150_s11, %s151_s12  }
   0x5   :  { %145 = dma.done.wait [#allocation3], 2048  }
   0x6   :  { %146 = vsyncadd [#allocation3], 4294965248  ;;  %v25_v0 = vld [vmem:[#allocation2] sm:$0xff]  ;;  %vm57_vm0 = vcmask 130048   ;;  %v26_v1 = vld [vmem:[#allocation2 + $0x8] sm:$0xff]  ;;  %s152_s0 = smov [#allocation5]  }
   0x7   :  { %v27_v2 = vld [vmem:[#allocation2 + $0x10] sm:$0xff]  ;;  %v41_v3 = vmax.f32 %v25_v0, 0.0  ;;  %v42_v4 = vmax.f32 %v26_v1, 0.0  ;;  %v28_v6 = vld [vmem:[#allocation2 + $0x18] sm:$0xff]  ;;  %v29_v7 = vld [vmem:[#allocation2 + $0x20] sm:$0xff]  ;;  %s78_s13 = sshll.u32 %s152_s0, 4  ;;  %s79_s13 = int_to_ptr.vmem [resolvable:$true] %s78_s13 }
   0x8   :  { %v43_v5 = vmax.f32 %v27_v2, 0.0  ;;  %v30_v8 = vld [vmem:[#allocation2 + $0x28] sm:$0xff]  ;;  %v44_v9 = vmax.f32 %v28_v6, 0.0  ;;  %v31_v10 = vld [vmem:[#allocation2 + $0x30] sm:$0xff]  ;;  %v45_v11 = vmax.f32 %v29_v7, 0.0  ;;  %v32_v12 = vld [vmem:[#allocation2 + $0x38] sm:$0xff] }
   0x9   :  { %58 = vst.msk [vmem:[#allocation5] sm:$0xff] %vm57_vm0, %v41_v3  ;;  %v46_v13 = vmax.f32 %v30_v8, 0.0  ;;  %v33_v14 = vld [vmem:[#allocation2 + $0x40] sm:$0xff]  ;;  %v47_v15 = vmax.f32 %v31_v10, 0.0  ;;  %v34_v16 = vld [vmem:[#allocation2 + $0x48] sm:$0xff]  ;;  %v48_v17 = vmax.f32 %v32_v12, 0.0 }
   0xa   :  { %59 = vst.msk [vmem:[#allocation5 + $0x8] sm:$0xff] %vm57_vm0, %v42_v4  ;;  %v35_v18 = vld [vmem:[#allocation2 + $0x50] sm:$0xff]  ;;  %v49_v19 = vmax.f32 %v33_v14, 0.0  ;;  %v36_v20 = vld [vmem:[#allocation2 + $0x58] sm:$0xff]  ;;  %v50_v21 = vmax.f32 %v34_v16, 0.0  ;;  %v37_v22 = vld [vmem:[#allocation2 + $0x60] sm:$0xff] }
   0xb   :  { %60 = vst.msk [vmem:[#allocation5 + $0x10] sm:$0xff] %vm57_vm0, %v43_v5  ;;  %v51_v23 = vmax.f32 %v35_v18, 0.0  ;;  %v38_v24 = vld [vmem:[#allocation2 + $0x68] sm:$0xff]  ;;  %v52_v25 = vmax.f32 %v36_v20, 0.0  ;;  %v39_v26 = vld [vmem:[#allocation2 + $0x70] sm:$0xff]  ;;  %v53_v27 = vmax.f32 %v37_v22, 0.0 }
   0xc   :  { %61 = vst.msk [vmem:[#allocation5 + $0x18] sm:$0xff] %vm57_vm0, %v44_v9  ;;  %v40_v28 = vld [vmem:[#allocation2 + $0x78] sm:$0xff]  ;;  %v54_v29 = vmax.f32 %v38_v24, 0.0  ;;  %v55_v30 = vmax.f32 %v39_v26, 0.0  ;;  %s80_s16 = sshll.u32 %s192_s1, 4  ;;  %s81_s16 = int_to_ptr.hbm [resolvable:$true] %s80_s16 }
   0xd   :  { %62 = vst.msk [vmem:[#allocation5 + $0x20] sm:$0xff] %vm57_vm0, %v45_v11  ;;  %v56_v31 = vmax.f32 %v40_v28, 0.0 }
   0xe   :  { %63 = vst.msk [vmem:[#allocation5 + $0x28] sm:$0xff] %vm57_vm0, %v46_v13 }
   0xf   :  { %64 = vst.msk [vmem:[#allocation5 + $0x30] sm:$0xff] %vm57_vm0, %v47_v15 }
  0x10   :  { %65 = vst.msk [vmem:[#allocation5 + $0x38] sm:$0xff] %vm57_vm0, %v48_v17 }
  0x11   :  { %66 = vst.msk [vmem:[#allocation5 + $0x40] sm:$0xff] %vm57_vm0, %v49_v19 }
  0x12   :  { %67 = vst.msk [vmem:[#allocation5 + $0x48] sm:$0xff] %vm57_vm0, %v50_v21 }
  0x13   :  { %68 = vst.msk [vmem:[#allocation5 + $0x50] sm:$0xff] %vm57_vm0, %v51_v23 }
  0x14   :  { %69 = vst.msk [vmem:[#allocation5 + $0x58] sm:$0xff] %vm57_vm0, %v52_v25 }
  0x15   :  { %70 = vst.msk [vmem:[#allocation5 + $0x60] sm:$0xff] %vm57_vm0, %v53_v27 }
  0x16   :  { %71 = vst.msk [vmem:[#allocation5 + $0x68] sm:$0xff] %vm57_vm0, %v54_v29 }
  0x17   :  { %72 = vst.msk [vmem:[#allocation5 + $0x70] sm:$0xff] %vm57_vm0, %v55_v30 }
  0x18   :  { %73 = vst.msk [vmem:[#allocation5 + $0x78] sm:$0xff] %vm57_vm0, %v56_v31 }
  0x19   :  { %86 = dma.vmem_to_hbm [thread:$0]  %s79_s13, 2048, %s81_s16, [#allocation4], %s150_s11, %s150_s11, %s151_s12  }
  0x1a   :  { %147 = dma.done.wait [#allocation4], 2048  }
  0x1b   :  { %148 = vsyncadd [#allocation4], 4294965248 }
  0x1c   :  { %91 = vsyncpa [#allocation3], 1 }
  0x1d   :  { %92 = vsyncpa [#allocation4], 1 }

</bundles_post_ra>
